<compile_context>
chip_gen: v6e
topology: v6e:2x2x1
jax: 0.10.0
libtpu: 0.0.40
codegen_flags: <defaults>
</compile_context>

<pallas_src>
import jax
import jax.numpy as jnp
from jax.experimental import pallas as pl
from jax.experimental.pallas import tpu as pltpu

_LANE = 128
_SUBLANE = 8
_SINGLE_BLOCK_MAX_ROWS = 1024  # below this, launch overhead dominates: one block


def _round_up(x, m):
    return (x + m - 1) // m * m


def _make_mos_head_kernel(layer_dims, compute_dtype):
    """Builds the fused 5x(Linear[+ReLU]) kernel.

    layer_dims: static list of (fan_in, fan_out) per layer (PyTorch Linear dims,
    with W stored transposed as (fan_in, fan_out) so y = x @ W + b).
    """
    n_layers = len(layer_dims)

    def kernel(x_ref, w_ref, b_ref, out_ref):
        # x stays in its HBM dtype; cast to the MXU operand dtype here (saves a
        # wrapper-side HBM pass over x).  Accumulation is f32 throughout.
        h = x_ref[...]
        for li, (fi, fo) in enumerate(layer_dims):
            w = w_ref[li, :fi, :fo]      # static slice of the packed weight slab
            b = b_ref[li, :, :fo]        # (1, fo) f32, broadcasts over rows
            h = jnp.dot(h.astype(compute_dtype), w,
                        preferred_element_type=jnp.float32) + b
            if li < n_layers - 1:
                h = jnp.maximum(h, 0.0)
        out_ref[...] = h.astype(out_ref.dtype)

    return kernel


def _pack_params(params, compute_dtype):
    """Packs per-layer (W, b) into two constant arrays.

    Returns (w_packed [L, max_in, max_out], b_packed [L, 1, max_out], layer_dims):
    one grid-invariant BlockSpec per packed array instead of 10 separate inputs.
    Zero padding in the packed slabs is never read (the kernel slices exact dims).
    """
    layer_dims = [(int(w.shape[0]), int(w.shape[1])) for (w, _) in params]
    n_layers = len(params)
    max_in = _round_up(max(fi for fi, _ in layer_dims), _SUBLANE)
    max_out = _round_up(max(fo for _, fo in layer_dims), _LANE)
    w_packed = jnp.zeros((n_layers, max_in, max_out), compute_dtype)
    b_packed = jnp.zeros((n_layers, 1, max_out), jnp.float32)
    for li, (w, b) in enumerate(params):
        fi, fo = layer_dims[li]
        w_packed = w_packed.at[li, :fi, :fo].set(jnp.asarray(w, compute_dtype))
        b_packed = b_packed.at[li, :1, :fo].set(
            jnp.asarray(b, jnp.float32).reshape(1, fo))
    return w_packed, b_packed, layer_dims


def mos_head_forward(x, params, *, tile_m=2048, compute_dtype=jnp.bfloat16,
                     out_dtype=None):
    """Apply the MOSHead MLP to x of shape [N, in_dim].

    params: list of (W, b) with W shaped (fan_in, fan_out), b shaped (1, fan_out)
    (i.e. the transpose of PyTorch's nn.Linear weight, so y = x @ W + b).
    Set out_dtype=jnp.bfloat16 to halve output writeback if consumers accept it.
    """
    n, in_dim = x.shape
    out_dim = int(params[-1][0].shape[1])
    if out_dtype is None:
        out_dtype = x.dtype

    w_packed, b_packed, layer_dims = _pack_params(params, compute_dtype)

    # ----- Row tiling -----------------------------------------------------
    if n <= min(_SINGLE_BLOCK_MAX_ROWS, tile_m):
        # Genuinely tiny N: single grid step.
        tm = max(_SUBLANE, _round_up(n, _SUBLANE))
        n_blocks = 1
    else:
        # Even number of balanced steps (>= 2) so v7x's 2 TensorCores split the
        # "parallel" grid axis evenly; padding stays < ~128 rows per block.
        n_blocks = pl.cdiv(n, tile_m)
        if n_blocks % 2:
            n_blocks += 1
        tm = _round_up(pl.cdiv(n, n_blocks), _LANE)
    n_pad = tm * n_blocks
    if n_pad != n:
        x = jnp.pad(x, ((0, n_pad - n), (0, 0)))

    # ----- Cost estimate (honest numbers for the unpadded layout) ----------
    flops = 2 * n_pad * sum(fi * fo for fi, fo in layer_dims)
    bytes_accessed = int(
        n_pad * in_dim * x.dtype.itemsize
        + n_pad * out_dim * jnp.dtype(out_dtype).itemsize
        + w_packed.size * w_packed.dtype.itemsize
        + b_packed.size * b_packed.dtype.itemsize)

    kernel = _make_mos_head_kernel(layer_dims, compute_dtype)

    out = pl.pallas_call(
        kernel,
        out_shape=jax.ShapeDtypeStruct((n_pad, out_dim), out_dtype),
        grid=(n_blocks,),
        in_specs=[
            pl.BlockSpec((tm, in_dim), lambda i: (i, 0)),
            # Packed weights / biases: full-array, grid-invariant blocks.
            pl.BlockSpec(w_packed.shape, lambda i: (0, 0, 0)),
            pl.BlockSpec(b_packed.shape, lambda i: (0, 0, 0)),
        ],
        # Full-row output block: contiguous HBM writeback, no column padding.
        out_specs=pl.BlockSpec((tm, out_dim), lambda i: (i, 0)),
        compiler_params=pltpu.CompilerParams(
            dimension_semantics=("parallel",)),
        cost_estimate=pl.CostEstimate(
            flops=flops, transcendentals=0, bytes_accessed=bytes_accessed),
    )(x, w_packed, b_packed)

    return out[:n] if n_pad != n else out


def mos_head_apply(x, params, **kwargs):
    """Mirrors MOSHead.forward: accepts a single array or a list of arrays.

    The list path is batched into a single pallas_call and split afterwards; each
    element is padded to a sublane multiple so the splits are 8-aligned.
    """
    if isinstance(x, list):
        if not x:
            return []
        sizes = [int(xi.shape[0]) for xi in x]
        pads = [_round_up(s, _SUBLANE) for s in sizes]
        x_cat = jnp.concatenate(
            [jnp.pad(xi, ((0, p - s), (0, 0)))
             for xi, s, p in zip(x, sizes, pads)], axis=0)
        out_cat = mos_head_forward(x_cat, params, **kwargs)
        outs, start = [], 0
        for s, p in zip(sizes, pads):
            outs.append(out_cat[start:start + s])
            start += p
        return outs
    return mos_head_forward(x, params, **kwargs)


def init_mos_head_params(key, in_dim, planes):
    """Deterministic init matching nn.Linear shapes.

    PyTorch nn.Linear(in, out) has weight (out, in), bias (out,). We store W
    transposed as (in, out) and bias as (1, out) so the kernel computes
    y = x @ W + b == x @ weight.T + bias.
    """
    params = []
    dims = [in_dim] + list(planes)
    for li in range(len(planes)):
        fan_in, fan_out = dims[li], dims[li + 1]
        key, kw, kb = jax.random.split(key, 3)
        bound = 1.0 / jnp.sqrt(fan_in)
        w = jax.random.uniform(kw, (fan_in, fan_out), jnp.float32, -bound, bound)
        b = jax.random.uniform(kb, (1, fan_out), jnp.float32, -bound, bound)
        params.append((w, b))
    return params


def _reference_forward(x, params):
    h = x
    n_layers = len(params)
    for li, (w, b) in enumerate(params):
        h = h @ w + b
        if li < n_layers - 1:
            h = jnp.maximum(h, 0.0)
    return h


if __name__ == "__main__":
    key = jax.random.PRNGKey(0)

    in_dim = 32
    planes = [64, 64, 32, 32, 3]   # MOS head: 3 output classes
    n_points = 256                 # "batch" of points fed into the head

    key, kx = jax.random.split(key)
    x = jax.random.normal(kx, (n_points, in_dim), jnp.float32)

    params = init_mos_head_params(key, in_dim, planes)
    ref = _reference_forward(x, params)

    # f32 compute path: exact-ish check against the pure-JAX reference.
    out_f32 = jax.block_until_ready(
        mos_head_forward(x, params, compute_dtype=jnp.float32))
    assert out_f32.shape == (n_points, planes[-1]), out_f32.shape
    assert jnp.allclose(out_f32, ref, atol=1e-4, rtol=1e-4), "f32 mismatch"

    # Default (bf16 operands / f32 accumulation) path.
    out = jax.block_until_ready(mos_head_apply(x, params))
    assert out.shape == (n_points, planes[-1]), out.shape
    assert jnp.allclose(out, ref, atol=5e-2, rtol=5e-2), "bf16 mismatch"

    # Multi-block grid path (row padding + even step count for v7x megacore),
    # exercised with a small tile so the example stays tiny:
    # n=1200, tile_m=512 -> 4 balanced blocks of 384 rows, n_pad=1536.
    key, kb = jax.random.split(key)
    xb = jax.random.normal(kb, (1200, in_dim), jnp.float32)
    refb = _reference_forward(xb, params)
    outb = jax.block_until_ready(mos_head_forward(xb, params, tile_m=512))
    assert outb.shape == (1200, planes[-1]), outb.shape
    assert jnp.allclose(outb, refb, atol=5e-2, rtol=5e-2), "tiled mismatch"

    # List-input path of MOSHead.forward (batched into one kernel launch).
    # Second element has a row count that is not a multiple of 8 to exercise
    # the per-element sublane padding.
    x2 = x[:100] * 0.5
    outs_list = jax.block_until_ready(mos_head_apply([x, x2], params))
    assert len(outs_list) == 2
    assert outs_list[0].shape == (n_points, planes[-1])
    assert outs_list[1].shape == (100, planes[-1])
    ref2 = _reference_forward(x2, params)
    assert jnp.allclose(outs_list[0], ref, atol=5e-2, rtol=5e-2)
    assert jnp.allclose(outs_list[1], ref2, atol=5e-2, rtol=5e-2)

    print("KERNEL_OK")
</pallas_src>

<mosaic_0001>
module attributes {stable_mosaic.version = 11 : i64} {
  func.func @kernel(%arg0: i32, %arg1: memref<256x32xf32, #tpu.memory_space<vmem>>, %arg2: memref<5x64x128xf32, #tpu.memory_space<vmem>>, %arg3: memref<5x1x128xf32, #tpu.memory_space<vmem>>, %arg4: memref<256x3xf32, #tpu.memory_space<vmem>>) attributes {dimension_semantics = [#tpu.dimension_semantics<parallel>], iteration_bounds = array<i64: 1>, scalar_prefetch = 0 : i64, scratch_operands = 0 : i64, tpu.core_type = #tpu.core_type<tc>, window_params = [{transform_indices = @transform_0, window_bounds = array<i64: 256, 32>}, {pipeline_mode = #tpu.pipeline_mode<synchronous>, transform_indices = @transform_1, window_bounds = array<i64: 5, 64, 128>}, {pipeline_mode = #tpu.pipeline_mode<synchronous>, transform_indices = @transform_2, window_bounds = array<i64: 5, 1, 128>}, {transform_indices = @transform_3, window_bounds = array<i64: 256, 3>}]} {
    %c0 = arith.constant 0 : index
    %c0_0 = arith.constant 0 : index
    %0 = vector.load %arg1[%c0, %c0_0] : memref<256x32xf32, #tpu.memory_space<vmem>>, vector<256x32xf32>
    %c0_1 = arith.constant 0 : index
    %c0_2 = arith.constant 0 : index
    %c0_3 = arith.constant 0 : index
    %1 = vector.load %arg2[%c0_1, %c0_2, %c0_3] : memref<5x64x128xf32, #tpu.memory_space<vmem>>, vector<1x32x64xf32>
    %2 = vector.shape_cast %1 : vector<1x32x64xf32> to vector<32x64xf32>
    %c0_4 = arith.constant 0 : index
    %c0_5 = arith.constant 0 : index
    %c0_6 = arith.constant 0 : index
    %3 = vector.load %arg3[%c0_4, %c0_5, %c0_6] : memref<5x1x128xf32, #tpu.memory_space<vmem>>, vector<1x1x64xf32>
    %4 = vector.shape_cast %3 : vector<1x1x64xf32> to vector<1x64xf32>
    %cst = arith.constant dense<0.000000e+00> : vector<256x64xf32>
    %5 = tpu.matmul %0, %2, %cst {dimension_numbers = #tpu.dot_dimension_numbers<[1], [0], [0], [1], [0, 0, 1, 1], [], []>} : vector<256x32xf32>, vector<32x64xf32>, vector<256x64xf32> -> vector<256x64xf32>
    %6 = vector.broadcast %4 : vector<1x64xf32> to vector<256x64xf32>
    %7 = arith.addf %5, %6 : vector<256x64xf32>
    %cst_7 = arith.constant 0.000000e+00 : f32
    %8 = vector.broadcast %cst_7 : f32 to vector<256x64xf32>
    %9 = arith.maximumf %7, %8 : vector<256x64xf32>
    %c1 = arith.constant 1 : index
    %c0_8 = arith.constant 0 : index
    %c0_9 = arith.constant 0 : index
    %10 = vector.load %arg2[%c1, %c0_8, %c0_9] : memref<5x64x128xf32, #tpu.memory_space<vmem>>, vector<1x64x64xf32>
    %11 = vector.shape_cast %10 : vector<1x64x64xf32> to vector<64x64xf32>
    %c1_10 = arith.constant 1 : index
    %c0_11 = arith.constant 0 : index
    %c0_12 = arith.constant 0 : index
    %12 = vector.load %arg3[%c1_10, %c0_11, %c0_12] : memref<5x1x128xf32, #tpu.memory_space<vmem>>, vector<1x1x64xf32>
    %13 = vector.shape_cast %12 : vector<1x1x64xf32> to vector<1x64xf32>
    %cst_13 = arith.constant dense<0.000000e+00> : vector<256x64xf32>
    %14 = tpu.matmul %9, %11, %cst_13 {dimension_numbers = #tpu.dot_dimension_numbers<[1], [0], [0], [1], [0, 0, 1, 1], [], []>} : vector<256x64xf32>, vector<64x64xf32>, vector<256x64xf32> -> vector<256x64xf32>
    %15 = vector.broadcast %13 : vector<1x64xf32> to vector<256x64xf32>
    %16 = arith.addf %14, %15 : vector<256x64xf32>
    %cst_14 = arith.constant 0.000000e+00 : f32
    %17 = vector.broadcast %cst_14 : f32 to vector<256x64xf32>
    %18 = arith.maximumf %16, %17 : vector<256x64xf32>
    %c2 = arith.constant 2 : index
    %c0_15 = arith.constant 0 : index
    %c0_16 = arith.constant 0 : index
    %19 = vector.load %arg2[%c2, %c0_15, %c0_16] : memref<5x64x128xf32, #tpu.memory_space<vmem>>, vector<1x64x32xf32>
    %20 = vector.shape_cast %19 : vector<1x64x32xf32> to vector<64x32xf32>
    %c2_17 = arith.constant 2 : index
    %c0_18 = arith.constant 0 : index
    %c0_19 = arith.constant 0 : index
    %21 = vector.load %arg3[%c2_17, %c0_18, %c0_19] : memref<5x1x128xf32, #tpu.memory_space<vmem>>, vector<1x1x32xf32>
    %22 = vector.shape_cast %21 : vector<1x1x32xf32> to vector<1x32xf32>
    %cst_20 = arith.constant dense<0.000000e+00> : vector<256x32xf32>
    %23 = tpu.matmul %18, %20, %cst_20 {dimension_numbers = #tpu.dot_dimension_numbers<[1], [0], [0], [1], [0, 0, 1, 1], [], []>} : vector<256x64xf32>, vector<64x32xf32>, vector<256x32xf32> -> vector<256x32xf32>
    %24 = vector.broadcast %22 : vector<1x32xf32> to vector<256x32xf32>
    %25 = arith.addf %23, %24 : vector<256x32xf32>
    %cst_21 = arith.constant 0.000000e+00 : f32
    %26 = vector.broadcast %cst_21 : f32 to vector<256x32xf32>
    %27 = arith.maximumf %25, %26 : vector<256x32xf32>
    %c3 = arith.constant 3 : index
    %c0_22 = arith.constant 0 : index
    %c0_23 = arith.constant 0 : index
    %28 = vector.load %arg2[%c3, %c0_22, %c0_23] : memref<5x64x128xf32, #tpu.memory_space<vmem>>, vector<1x32x32xf32>
    %29 = vector.shape_cast %28 : vector<1x32x32xf32> to vector<32x32xf32>
    %c3_24 = arith.constant 3 : index
    %c0_25 = arith.constant 0 : index
    %c0_26 = arith.constant 0 : index
    %30 = vector.load %arg3[%c3_24, %c0_25, %c0_26] : memref<5x1x128xf32, #tpu.memory_space<vmem>>, vector<1x1x32xf32>
    %31 = vector.shape_cast %30 : vector<1x1x32xf32> to vector<1x32xf32>
    %cst_27 = arith.constant dense<0.000000e+00> : vector<256x32xf32>
    %32 = tpu.matmul %27, %29, %cst_27 {dimension_numbers = #tpu.dot_dimension_numbers<[1], [0], [0], [1], [0, 0, 1, 1], [], []>} : vector<256x32xf32>, vector<32x32xf32>, vector<256x32xf32> -> vector<256x32xf32>
    %33 = vector.broadcast %31 : vector<1x32xf32> to vector<256x32xf32>
    %34 = arith.addf %32, %33 : vector<256x32xf32>
    %cst_28 = arith.constant 0.000000e+00 : f32
    %35 = vector.broadcast %cst_28 : f32 to vector<256x32xf32>
    %36 = arith.maximumf %34, %35 : vector<256x32xf32>
    %c4 = arith.constant 4 : index
    %c0_29 = arith.constant 0 : index
    %c0_30 = arith.constant 0 : index
    %37 = vector.load %arg2[%c4, %c0_29, %c0_30] : memref<5x64x128xf32, #tpu.memory_space<vmem>>, vector<1x32x3xf32>
    %38 = vector.shape_cast %37 : vector<1x32x3xf32> to vector<32x3xf32>
    %c4_31 = arith.constant 4 : index
    %c0_32 = arith.constant 0 : index
    %c0_33 = arith.constant 0 : index
    %39 = vector.load %arg3[%c4_31, %c0_32, %c0_33] : memref<5x1x128xf32, #tpu.memory_space<vmem>>, vector<1x1x3xf32>
    %40 = vector.shape_cast %39 : vector<1x1x3xf32> to vector<1x3xf32>
    %cst_34 = arith.constant dense<0.000000e+00> : vector<256x3xf32>
    %41 = tpu.matmul %36, %38, %cst_34 {dimension_numbers = #tpu.dot_dimension_numbers<[1], [0], [0], [1], [0, 0, 1, 1], [], []>} : vector<256x32xf32>, vector<32x3xf32>, vector<256x3xf32> -> vector<256x3xf32>
    %42 = vector.broadcast %40 : vector<1x3xf32> to vector<256x3xf32>
    %43 = arith.addf %41, %42 : vector<256x3xf32>
    %c0_35 = arith.constant 0 : index
    %c0_36 = arith.constant 0 : index
    %44 = vector.load %arg4[%c0_35, %c0_36] : memref<256x3xf32, #tpu.memory_space<vmem>>, vector<256x3xf32>
    tpu.vector_store %arg4[%c0_35, %c0_36], %43 {strides = array<i32>} : memref<256x3xf32, #tpu.memory_space<vmem>>, vector<256x3xf32>,
    return
  }
  func.func @transform_0(%arg0: i32) -> (i32, i32) {
    %c0_i32 = arith.constant 0 : i32
    %c0_i32_0 = arith.constant 0 : i32
    return %arg0, %c0_i32 : i32, i32
  }
  func.func @transform_1(%arg0: i32) -> (i32, i32, i32) {
    %c0_i32 = arith.constant 0 : i32
    %c0_i32_0 = arith.constant 0 : i32
    %c0_i32_1 = arith.constant 0 : i32
    %c0_i32_2 = arith.constant 0 : i32
    return %c0_i32, %c0_i32_0, %c0_i32_1 : i32, i32, i32
  }
  func.func @transform_2(%arg0: i32) -> (i32, i32, i32) {
    %c0_i32 = arith.constant 0 : i32
    %c0_i32_0 = arith.constant 0 : i32
    %c0_i32_1 = arith.constant 0 : i32
    %c0_i32_2 = arith.constant 0 : i32
    return %c0_i32, %c0_i32_0, %c0_i32_1 : i32, i32, i32
  }
  func.func @transform_3(%arg0: i32) -> (i32, i32) {
    %c0_i32 = arith.constant 0 : i32
    %c0_i32_0 = arith.constant 0 : i32
    return %arg0, %c0_i32 : i32, i32
  }
}

</mosaic_0001>

<bundles_post_ra>
// kernel: tpu_custom_call.1
= control target key start
LH: loop header
LB: loop body
LE: loop exit
PB: predicated region body
PF: predicated region fallthrough
CT: control target
= control target key end

     0   :  { %8 = vsyncpa [#allocation3], 0  ;;  %s2610_s12 = smov [#allocation2]   ;;  %s3283_s0 = inlined_call_operand.vmem [shape: f32[256,32], index: 0, kind: input, shape index: {}]   ;;  %s3284_s1 = inlined_call_operand.vmem [shape: f32[5,64,128], index: 1, kind: input, shape index: {}]   ;;  %s3285_s2 = inlined_call_operand.hbm [shape: f32[5,1,128], index: 2, kind: input, shape index: {}]   ;;  %s3286_s3 = inlined_call_operand.vmem [shape: f32[256,3], index: 3, kind: output, shape index: {}]  }
   0x1   :  { %s18_s13 = sshll.u32 %s2610_s12, 4  ;;  %s19_s13 = int_to_ptr.vmem [resolvable:$true] %s18_s13 }
   0x2   :  { %s2596_s14 = scalar_lea.vmem %s19_s13, 80  ;;  %s2600_s15 = scalar_lea.vmem %s19_s13, 96 }
   0x3   :  { %p2597_p0 = scmp.ne.s32.totalorder %s19_s13, %s2596_s14  ;;  %p2601_p1 = scmp.lt.s32.totalorder %s19_s13, %s19_s13 }
   0x4   :  { %p2602_p2 = scmp.lt.s32.totalorder %s2600_s15, %s2596_s14 }
   0x6   :  { %p2603_p3 = por %p2602_p2, %p2601_p1 }
   0x8   :  { %p2604_p4 = pnand %p2603_p3, %p2597_p0 }
   0xa   :  { %2607 = shalt.err (!%p2604_p4)
}
   0xb   :  { %s2611_s16 = smov 16   ;;  %s2612_s17 = smov 1  }
   0xc   :  { %24 = dma.hbm_to_vmem [thread:$0]  %s3285_s2, 80, %s19_s13, [#allocation3], %s2611_s16, %s2611_s16, %s2612_s17  }
   0xd   :  { %2608 = dma.done.wait [#allocation3], 80  }
   0xe   :  { %2609 = vsyncadd [#allocation3], 4294967216  ;;  %vm71_vm0 = vcmask 261120   ;;  %v63_v0 = vld [vmem:[%s3284_s1 + $0x18] sm:$0xff]  ;;  %v62_v1 = vld [vmem:[%s3284_s1 + $0x10] sm:$0xff]  ;;  %vm442_vm1 = vcmask 523264  }
   0xf   :  { %2281 = vmatprep.subr.mxu0 %v63_v0  ;;  %v28_v2 = vld [vmem:[%s3283_s0] sm:$0xff]  ;;  %2577 = vmatprep.subr.mxu1 %v63_v0  ;;  %v61_v3 = vld [vmem:[%s3284_s1 + $0x8] sm:$0xff]  ;;  %v30_v6 = vld [vmem:[%s3283_s0 + $0x10] sm:$0xff]  ;;  %vm1866_vm2 = vcmask 23552  }
  0x10   :  { %2282 = vmatpush3.msra.mxu0 %v63_v0  ;;  %2289 = vmatprep.mubr.msk.f32.mxu0 %vm71_vm0, %v28_v2  ;;  %v60_v4 = vld [vmem:[%s3284_s1] sm:$0xff]  ;;  %v29_v5 = vld [vmem:[%s3283_s0 + $0x8] sm:$0xff]  ;;  %v46_v9 = vld [vmem:[%s3283_s0 + $0x90] sm:$0xff] }
  0x11   :  { %2283 = vmatprep.subr.mxu0 %v62_v1  ;;  %2581 = vmatpush3.msra.mxu1 %v63_v0  ;;  %v44_v7 = vld [vmem:[%s3283_s0 + $0x80] sm:$0xff]  ;;  %v45_v8 = vld [vmem:[%s3283_s0 + $0x88] sm:$0xff]  ;;  %v31_v10 = vld [vmem:[%s3283_s0 + $0x18] sm:$0xff] }
  0x12   :  { %2284 = vmatpush3.msra.mxu0 %v62_v1  ;;  %2578 = vmatprep.subr.mxu1 %v62_v1  ;;  %v32_v11 = vld [vmem:[%s3283_s0 + $0x20] sm:$0xff]  ;;  %v47_v12 = vld [vmem:[%s3283_s0 + $0x98] sm:$0xff]  ;;  %v1943_v14 = vld [vmem:[%s3284_s1 + $0x70] sm:$0xff] }
  0x13   :  { %2285 = vmatprep.subr.mxu0 %v61_v3  ;;  %2582 = vmatpush3.msra.mxu1 %v62_v1  ;;  %v1944_v13 = vld [vmem:[%s3284_s1 + $0x78] sm:$0xff]  ;;  %v48_v15 = vld [vmem:[%s3283_s0 + $0xa0] sm:$0xff]  ;;  %v33_v16 = vld [vmem:[%s3283_s0 + $0x28] sm:$0xff] }
  0x14   :  { %2286 = vmatpush3.msra.mxu0 %v61_v3  ;;  %2579 = vmatprep.subr.mxu1 %v61_v3  ;;  %v1942_v17 = vld [vmem:[%s3284_s1 + $0x68] sm:$0xff]  ;;  %v34_v18 = vld [vmem:[%s3283_s0 + $0x30] sm:$0xff]  ;;  %v1941_v20 = vld [vmem:[%s3284_s1 + $0x60] sm:$0xff] }
  0x15   :  { %2287 = vmatprep.subr.mxu0 %v60_v4  ;;  %2583 = vmatpush3.msra.mxu1 %v61_v3  ;;  %v49_v19 = vld [vmem:[%s3283_s0 + $0xa8] sm:$0xff]  ;;  %v50_v21 = vld [vmem:[%s3283_s0 + $0xb0] sm:$0xff]  ;;  %v35_v22 = vld [vmem:[%s3283_s0 + $0x38] sm:$0xff] }
  0x16   :  { %2288 = vmatpush3.msra.mxu0 %v60_v4  ;;  %2580 = vmatprep.subr.mxu1 %v60_v4  ;;  %v1940_v23 = vld [vmem:[%s3284_s1 + $0x58] sm:$0xff]  ;;  %v36_v24 = vld [vmem:[%s3283_s0 + $0x40] sm:$0xff]  ;;  %v1939_v26 = vld [vmem:[%s3284_s1 + $0x50] sm:$0xff] }
  0x17   :  { %2290 = vmatmul.mubr.msk.f32.vlgmr.msra.gmra.mxu0 %vm71_vm0, %v29_v5  ;;  %2584 = vmatpush3.msra.mxu1 %v60_v4  ;;  %v51_v25 = vld [vmem:[%s3283_s0 + $0xb8] sm:$0xff]  ;;  %v52_v27 = vld [vmem:[%s3283_s0 + $0xc0] sm:$0xff]  ;;  %v37_v28 = vld [vmem:[%s3283_s0 + $0x48] sm:$0xff] }
  0x18   :  { %2292 = vmatprep.mubr.msk.f32.mxu0 %vm71_vm0, %v30_v6  ;;  %2313 = vmatprep.mubr.msk.f32.mxu1 %vm71_vm0, %v44_v7  ;;  %v1938_v29 = vld [vmem:[%s3284_s1 + $0x48] sm:$0xff]  ;;  %v38_v30 = vld [vmem:[%s3283_s0 + $0x50] sm:$0xff]  ;;  %v39_v33 = vld [vmem:[%s3283_s0 + $0x58] sm:$0xff] }
  0x19   :  { %2314 = vmatmul.mubr.msk.f32.vlgmr.msra.gmra.mxu1 %vm71_vm0, %v45_v8  ;;  %2337 = vmatprep.subr.mxu1 %v1944_v13  ;;  %v53_v31 = vld [vmem:[%s3283_s0 + $0xc8] sm:$0xff]  ;;  %v54_v32 = vld [vmem:[%s3283_s0 + $0xd0] sm:$0xff]  ;;  %v40_v34 = vld [vmem:[%s3283_s0 + $0x60] sm:$0xff] }
  0x1a   :  { %2316 = vmatprep.mubr.msk.f32.mxu1 %vm71_vm0, %v46_v9  ;;  %2338 = vmatpush3.msra.mxu1 %v1944_v13  ;;  %v55_v35 = vld [vmem:[%s3283_s0 + $0xd8] sm:$0xff]  ;;  %v56_v36 = vld [vmem:[%s3283_s0 + $0xe0] sm:$0xff]  ;;  %v41_v37 = vld [vmem:[%s3283_s0 + $0x68] sm:$0xff] }
  0x1b   :  { %2293 = vmatmul.mubr.msk.f32.gmra.mxu0 %vm71_vm0, %v31_v10  ;;  %2339 = vmatprep.subr.mxu1 %v1943_v14  ;;  %v42_v38 = vld [vmem:[%s3283_s0 + $0x70] sm:$0xff]  ;;  %v57_v39 = vld [vmem:[%s3283_s0 + $0xe8] sm:$0xff]  ;;  %v43_v41 = vld [vmem:[%s3283_s0 + $0x78] sm:$0xff] }
  0x1c   :  { %2295 = vmatprep.mubr.msk.f32.mxu0 %vm71_vm0, %v32_v11  ;;  %2340 = vmatpush3.msra.mxu1 %v1943_v14  ;;  %v58_v40 = vld [vmem:[%s3283_s0 + $0xf0] sm:$0xff]  ;;  %v59_v42 = vld [vmem:[%s3283_s0 + $0xf8] sm:$0xff]  ;;  %v1937_v43 = vld [vmem:[%s3284_s1 + $0x40] sm:$0xff] }
  0x1d   :  { %2317 = vmatmul.mubr.msk.f32.gmra.mxu1 %vm71_vm0, %v47_v12  ;;  %2341 = vmatprep.subr.mxu1 %v1942_v17  ;;  %v1985_v44 = vld [vmem:[%s3284_s1 + $0xb8] sm:$0xff]  ;;  %v1984_v45 = vld [vmem:[%s3284_s1 + $0xb0] sm:$0xff]  ;;  %v1983_v46 = vld [vmem:[%s3284_s1 + $0xa8] sm:$0xff] }
  0x1e   :  { %2319 = vmatprep.mubr.msk.f32.mxu1 %vm71_vm0, %v48_v15  ;;  %2342 = vmatpush3.msra.mxu1 %v1942_v17  ;;  %v1982_v47 = vld [vmem:[%s3284_s1 + $0xa0] sm:$0xff]  ;;  %v1981_v48 = vld [vmem:[%s3284_s1 + $0x98] sm:$0xff]  ;;  %v1980_v49 = vld [vmem:[%s3284_s1 + $0x90] sm:$0xff] }
  0x1f   :  { %2296 = vmatmul.mubr.msk.f32.gmra.mxu0 %vm71_vm0, %v33_v16  ;;  %2343 = vmatprep.subr.mxu1 %v1941_v20  ;;  %v1979_v50 = vld [vmem:[%s3284_s1 + $0x88] sm:$0xff]  ;;  %v2821_v51 = vld [vmem:[#allocation2] ss:$0 sm:$0xff] }
  0x20   :  { %2298 = vmatprep.mubr.msk.f32.mxu0 %vm71_vm0, %v34_v18  ;;  %2344 = vmatpush3.msra.mxu1 %v1941_v20 }
  0x21   :  { %2320 = vmatmul.mubr.msk.f32.gmra.mxu1 %vm71_vm0, %v49_v19  ;;  %2345 = vmatprep.subr.mxu1 %v1940_v23 }
  0x22   :  { %2322 = vmatprep.mubr.msk.f32.mxu1 %vm71_vm0, %v50_v21  ;;  %2346 = vmatpush3.msra.mxu1 %v1940_v23 }
  0x23   :  { %2299 = vmatmul.mubr.msk.f32.gmra.mxu0 %vm71_vm0, %v35_v22  ;;  %2347 = vmatprep.subr.mxu1 %v1939_v26 }
  0x24   :  { %2301 = vmatprep.mubr.msk.f32.mxu0 %vm71_vm0, %v36_v24  ;;  %2348 = vmatpush3.msra.mxu1 %v1939_v26 }
  0x25   :  { %2323 = vmatmul.mubr.msk.f32.gmra.mxu1 %vm71_vm0, %v51_v25  ;;  %2349 = vmatprep.subr.mxu1 %v1938_v29 }
  0x26   :  { %2325 = vmatprep.mubr.msk.f32.mxu1 %vm71_vm0, %v52_v27  ;;  %2350 = vmatpush3.msra.mxu1 %v1938_v29 }
  0x27   :  { %2302 = vmatmul.mubr.msk.f32.gmra.mxu0 %vm71_vm0, %v37_v28  ;;  %2351 = vmatprep.subr.mxu1 %v1937_v43 }
  0x28   :  { %2304 = vmatprep.mubr.msk.f32.mxu0 %vm71_vm0, %v38_v30  ;;  %2352 = vmatpush3.msra.mxu1 %v1937_v43 }
  0x29   :  { %2326 = vmatmul.mubr.msk.f32.gmra.mxu1 %vm71_vm0, %v53_v31  ;;  %2401 = vmatprep.subr.mxu0 %v1985_v44 }
  0x2a   :  { %2328 = vmatprep.mubr.msk.f32.mxu1 %vm71_vm0, %v54_v32  ;;  %2402 = vmatpush3.msra.mxu0 %v1985_v44 }
  0x2b   :  { %2305 = vmatmul.mubr.msk.f32.gmra.mxu0 %vm71_vm0, %v39_v33  ;;  %2403 = vmatprep.subr.mxu0 %v1984_v45 }
  0x2c   :  { %2307 = vmatprep.mubr.msk.f32.mxu0 %vm71_vm0, %v40_v34  ;;  %2404 = vmatpush3.msra.mxu0 %v1984_v45 }
  0x2d   :  { %2329 = vmatmul.mubr.msk.f32.gmra.mxu1 %vm71_vm0, %v55_v35  ;;  %2405 = vmatprep.subr.mxu0 %v1983_v46 }
  0x2e   :  { %2331 = vmatprep.mubr.msk.f32.mxu1 %vm71_vm0, %v56_v36  ;;  %2406 = vmatpush3.msra.mxu0 %v1983_v46 }
  0x2f   :  { %2308 = vmatmul.mubr.msk.f32.gmra.mxu0 %vm71_vm0, %v41_v37  ;;  %2407 = vmatprep.subr.mxu0 %v1982_v47 }
  0x30   :  { %2310 = vmatprep.mubr.msk.f32.mxu0 %vm71_vm0, %v42_v38  ;;  %2408 = vmatpush3.msra.mxu0 %v1982_v47 }
  0x31   :  { %2332 = vmatmul.mubr.msk.f32.gmra.mxu1 %vm71_vm0, %v57_v39  ;;  %2409 = vmatprep.subr.mxu0 %v1981_v48 }
  0x32   :  { %2334 = vmatprep.mubr.msk.f32.mxu1 %vm71_vm0, %v58_v40  ;;  %2410 = vmatpush3.msra.mxu0 %v1981_v48 }
  0x33   :  { %2311 = vmatmul.mubr.msk.f32.gmra.mxu0 %vm71_vm0, %v43_v41  ;;  %2411 = vmatprep.subr.mxu0 %v1980_v49 }
  0x34   :  { %2412 = vmatpush3.msra.mxu0 %v1980_v49 }
  0x35   :  { %2335 = vmatmul.mubr.msk.f32.gmra.mxu1 %vm71_vm0, %v59_v42  ;;  %2413 = vmatprep.subr.mxu0 %v1979_v50 }
  0x36   :  { %2414 = vmatpush3.msra.mxu0 %v1979_v50 }
  0xd7   :  { %v2291_v52 = vpop.f32.mrf.mxu0 }
  0xd8   :  { %v240_v53 = vadd.f32 %v2291_v52, %v2821_v51 }
  0xd9   :  { %v234_v54 = vpop.f32.mrf.mxu0  ;;  %v2824_v55 = vpop.f32.mrf.mxu1 }
  0xda   :  { %v235_v56 = vadd.f32 %v2821_v51, %v234_v54  ;;  %v394_v60 = vmax.f32 %v240_v53, 0.0  ;;  %v320_v49 = vadd.f32 %v2824_v55, %v2821_v51 }
  0xdb   :  { %v2294_v57 = vpop.f32.mrf.mxu0  ;;  %v314_v58 = vpop.f32.mrf.mxu1 }
  0xdc   :  { %v393_v59 = vmax.f32 %v235_v56, 0.0  ;;  %v250_v61 = vadd.f32 %v2294_v57, %v2821_v51  ;;  %v315_v39 = vadd.f32 %v2821_v51, %v314_v58  ;;  %v410_v54 = vmax.f32 %v320_v49, 0.0 }
  0xdd   :  { %v244_v62 = vpop.f32.mrf.mxu0  ;;  %v2828_v63 = vpop.f32.mrf.mxu1 }
  0xde   :  { %v245_v0 = vadd.f32 %v2821_v51, %v244_v62  ;;  %2353 = vmatprep.mubr.msk.f32.mxu1 %vm442_vm1, %v393_v59  ;;  %v396_v4 = vmax.f32 %v250_v61, 0.0  ;;  %v409_v46 = vmax.f32 %v315_v39, 0.0  ;;  %v330_v56 = vadd.f32 %v2828_v63, %v2821_v51 }
  0xdf   :  { %v2297_v1 = vpop.f32.mrf.mxu0  ;;  %2354 = vmatmul.mubr.msk.f32.vlgmr.msra.gmra.mxu1 %vm442_vm1, %v394_v60  ;;  %v324_v2 = vpop.f32.mrf.mxu1 }
  0xe0   :  { %v395_v3 = vmax.f32 %v245_v0, 0.0  ;;  %v260_v5 = vadd.f32 %v2297_v1, %v2821_v51  ;;  %v325_v47 = vadd.f32 %v2821_v51, %v324_v2  ;;  %v412_v59 = vmax.f32 %v330_v56, 0.0 }
  0xe1   :  { %v254_v6 = vpop.f32.mrf.mxu0  ;;  %v2834_v7 = vpop.f32.mrf.mxu1 }
  0xe2   :  { %v255_v8 = vadd.f32 %v2821_v51, %v254_v6  ;;  %2356 = vmatprep.mubr.msk.f32.mxu1 %vm442_vm1, %v395_v3  ;;  %v398_v11 = vmax.f32 %v260_v5, 0.0  ;;  %v411_v52 = vmax.f32 %v325_v47, 0.0  ;;  %v340_v60 = vadd.f32 %v2834_v7, %v2821_v51 }
  0xe3   :  { %v2300_v9 = vpop.f32.mrf.mxu0  ;;  %2357 = vmatmul.mubr.msk.f32.gmra.mxu1 %vm442_vm1, %v396_v4  ;;  %v334_v14 = vpop.f32.mrf.mxu1 }
  0xe4   :  { %v397_v10 = vmax.f32 %v255_v8, 0.0  ;;  %v270_v12 = vadd.f32 %v2300_v9, %v2821_v51  ;;  %v335_v53 = vadd.f32 %v2821_v51, %v334_v14  ;;  %v414_v0 = vmax.f32 %v340_v60, 0.0 }
  0xe5   :  { %v264_v13 = vpop.f32.mrf.mxu0  ;;  %v2324_v21 = vpop.f32.mrf.mxu1 }
  0xe6   :  { %v265_v15 = vadd.f32 %v2821_v51, %v264_v13  ;;  %2359 = vmatprep.mubr.msk.f32.mxu1 %vm442_vm1, %v397_v10  ;;  %v400_v18 = vmax.f32 %v270_v12, 0.0  ;;  %v413_v58 = vmax.f32 %v335_v53, 0.0  ;;  %v350_v1 = vadd.f32 %v2324_v21, %v2821_v51  ;;  %v1978_v21 = vld [vmem:[%s3284_s1 + $0x80] sm:$0xff] }
  0xe7   :  { %v2303_v16 = vpop.f32.mrf.mxu0  ;;  %2360 = vmatmul.mubr.msk.f32.gmra.mxu1 %vm442_vm1, %v398_v11  ;;  %v344_v28 = vpop.f32.mrf.mxu1  ;;  %2415 = vmatprep.subr.mxu0 %v1978_v21 }
  0xe8   :  { %v399_v17 = vmax.f32 %v265_v15, 0.0  ;;  %v280_v19 = vadd.f32 %v2303_v16, %v2821_v51  ;;  %v345_v55 = vadd.f32 %v2821_v51, %v344_v28  ;;  %v416_v5 = vmax.f32 %v350_v1, 0.0  ;;  %2416 = vmatpush3.msra.mxu0 %v1978_v21 }
  0xe9   :  { %v274_v20 = vpop.f32.mrf.mxu0  ;;  %v2327_v35 = vpop.f32.mrf.mxu1 }
  0xea   :  { %v275_v22 = vadd.f32 %v2821_v51, %v274_v20  ;;  %2362 = vmatprep.mubr.msk.f32.mxu1 %vm442_vm1, %v399_v17  ;;  %v402_v25 = vmax.f32 %v280_v19, 0.0  ;;  %v415_v62 = vmax.f32 %v345_v55, 0.0  ;;  %v360_v6 = vadd.f32 %v2327_v35, %v2821_v51 }
  0xeb   :  { %v2306_v23 = vpop.f32.mrf.mxu0  ;;  %2363 = vmatmul.mubr.msk.f32.gmra.mxu1 %vm442_vm1, %v400_v18  ;;  %v354_v43 = vpop.f32.mrf.mxu1 }
  0xec   :  { %v401_v24 = vmax.f32 %v275_v22, 0.0  ;;  %v290_v26 = vadd.f32 %v2306_v23, %v2821_v51  ;;  %v355_v63 = vadd.f32 %v2821_v51, %v354_v43  ;;  %v418_v10 = vmax.f32 %v360_v6, 0.0  ;;  %v2022_v22 = vld [vmem:[%s3284_s1 + $0xd8] sm:$0xff]  ;;  %v2020_v23 = vld [vmem:[%s3284_s1 + $0xc8] sm:$0xff] }
  0xed   :  { %v284_v27 = vpop.f32.mrf.mxu0  ;;  %v2330_v50 = vpop.f32.mrf.mxu1  ;;  %2465 = vmatprep.subr.mxu1 %v2022_v22 }
  0xee   :  { %v285_v29 = vadd.f32 %v2821_v51, %v284_v27  ;;  %2365 = vmatprep.mubr.msk.f32.mxu1 %vm442_vm1, %v401_v24  ;;  %v404_v32 = vmax.f32 %v290_v26, 0.0  ;;  %v417_v3 = vmax.f32 %v355_v63, 0.0  ;;  %v370_v11 = vadd.f32 %v2330_v50, %v2821_v51  ;;  %2466 = vmatpush3.msra.mxu1 %v2022_v22  ;;  %v2019_v24 = vld [vmem:[%s3284_s1 + $0xc0] sm:$0xff] }
  0xef   :  { %v2309_v30 = vpop.f32.mrf.mxu0  ;;  %2366 = vmatmul.mubr.msk.f32.gmra.mxu1 %vm442_vm1, %v402_v25  ;;  %v364_v57 = vpop.f32.mrf.mxu1  ;;  %v2911_v25 = vld [vmem:[#allocation2 + $0x1] ss:$0 sm:$0xff] }
  0xf0   :  { %v403_v31 = vmax.f32 %v285_v29, 0.0  ;;  %v300_v33 = vadd.f32 %v2309_v30, %v2821_v51  ;;  %v365_v4 = vadd.f32 %v2821_v51, %v364_v57  ;;  %v420_v15 = vmax.f32 %v370_v11, 0.0 }
  0xf1   :  { %v294_v34 = vpop.f32.mrf.mxu0  ;;  %v2333_v61 = vpop.f32.mrf.mxu1 }
  0xf2   :  { %v295_v36 = vadd.f32 %v2821_v51, %v294_v34  ;;  %2368 = vmatprep.mubr.msk.f32.mxu1 %vm442_vm1, %v403_v31  ;;  %v406_v40 = vmax.f32 %v300_v33, 0.0  ;;  %v419_v8 = vmax.f32 %v365_v4, 0.0  ;;  %v380_v16 = vadd.f32 %v2333_v61, %v2821_v51 }
  0xf3   :  { %v2312_v37 = vpop.f32.mrf.mxu0  ;;  %2369 = vmatmul.mubr.msk.f32.gmra.mxu1 %vm442_vm1, %v404_v32  ;;  %v374_v2 = vpop.f32.mrf.mxu1 }
  0xf4   :  { %v405_v38 = vmax.f32 %v295_v36, 0.0  ;;  %v310_v41 = vadd.f32 %v2312_v37, %v2821_v51  ;;  %v375_v9 = vadd.f32 %v2821_v51, %v374_v2  ;;  %v422_v18 = vmax.f32 %v380_v16, 0.0 }
  0xf5   :  { %v304_v42 = vpop.f32.mrf.mxu0  ;;  %v2336_v7 = vpop.f32.mrf.mxu1 }
  0xf6   :  { %v305_v44 = vadd.f32 %v2821_v51, %v304_v42  ;;  %2371 = vmatprep.mubr.msk.f32.mxu1 %vm442_vm1, %v405_v38  ;;  %v408_v48 = vmax.f32 %v310_v41, 0.0  ;;  %v421_v13 = vmax.f32 %v375_v9, 0.0  ;;  %v390_v19 = vadd.f32 %v2336_v7, %v2821_v51 }
  0xf7   :  { %2372 = vmatmul.mubr.msk.f32.gmra.mxu1 %vm442_vm1, %v406_v40  ;;  %v384_v12 = vpop.f32.mrf.mxu1 }
  0xf8   :  { %v407_v45 = vmax.f32 %v305_v44, 0.0  ;;  %v385_v14 = vadd.f32 %v2821_v51, %v384_v12  ;;  %v424_v20 = vmax.f32 %v390_v19, 0.0  ;;  %v2021_v51 = vld [vmem:[%s3284_s1 + $0xd0] sm:$0xff] }
  0xf9   :  { %2467 = vmatprep.subr.mxu1 %v2021_v51 }
  0xfa   :  { %2374 = vmatprep.mubr.msk.f32.mxu1 %vm442_vm1, %v407_v45  ;;  %v423_v17 = vmax.f32 %v385_v14, 0.0  ;;  %2468 = vmatpush3.msra.mxu1 %v2021_v51 }
  0xfb   :  { %2375 = vmatmul.mubr.msk.f32.gmra.mxu1 %vm442_vm1, %v408_v48  ;;  %2469 = vmatprep.subr.mxu1 %v2020_v23 }
  0xfc   :  { %2377 = vmatprep.mubr.msk.f32.mxu1 %vm442_vm1, %v409_v46  ;;  %2470 = vmatpush3.msra.mxu1 %v2020_v23 }
  0xfd   :  { %2471 = vmatprep.subr.mxu1 %v2019_v24 }
  0xfe   :  { %2472 = vmatpush3.msra.mxu1 %v2019_v24 }
  0xff   :  { %2378 = vmatmul.mubr.msk.f32.gmra.mxu1 %vm442_vm1, %v410_v54 }
 0x100   :  { %2380 = vmatprep.mubr.msk.f32.mxu1 %vm442_vm1, %v411_v52 }
 0x103   :  { %2381 = vmatmul.mubr.msk.f32.gmra.mxu1 %vm442_vm1, %v412_v59 }
 0x104   :  { %2383 = vmatprep.mubr.msk.f32.mxu1 %vm442_vm1, %v413_v58 }
 0x107   :  { %2384 = vmatmul.mubr.msk.f32.gmra.mxu1 %vm442_vm1, %v414_v0 }
 0x108   :  { %2386 = vmatprep.mubr.msk.f32.mxu1 %vm442_vm1, %v415_v62 }
 0x10b   :  { %2387 = vmatmul.mubr.msk.f32.gmra.mxu1 %vm442_vm1, %v416_v5 }
 0x10c   :  { %2389 = vmatprep.mubr.msk.f32.mxu1 %vm442_vm1, %v417_v3 }
 0x10f   :  { %2390 = vmatmul.mubr.msk.f32.gmra.mxu1 %vm442_vm1, %v418_v10 }
 0x110   :  { %2392 = vmatprep.mubr.msk.f32.mxu1 %vm442_vm1, %v419_v8 }
 0x113   :  { %2393 = vmatmul.mubr.msk.f32.gmra.mxu1 %vm442_vm1, %v420_v15 }
 0x114   :  { %2395 = vmatprep.mubr.msk.f32.mxu1 %vm442_vm1, %v421_v13 }
 0x117   :  { %2396 = vmatmul.mubr.msk.f32.gmra.mxu1 %vm442_vm1, %v422_v18 }
 0x118   :  { %2398 = vmatprep.mubr.msk.f32.mxu1 %vm442_vm1, %v423_v17 }
 0x11b   :  { %2399 = vmatmul.mubr.msk.f32.gmra.mxu1 %vm442_vm1, %v424_v20 }
 0x19f   :  { %v2355_v26 = vpop.f32.mrf.mxu1 }
 0x1a0   :  { %v611_v27 = vadd.f32 %v2355_v26, %v2911_v25 }
 0x1a1   :  { %v605_v28 = vpop.f32.mrf.mxu1 }
 0x1a2   :  { %v606_v29 = vadd.f32 %v2911_v25, %v605_v28  ;;  %v765_v32 = vmax.f32 %v611_v27, 0.0 }
 0x1a3   :  { %v2358_v30 = vpop.f32.mrf.mxu1 }
 0x1a4   :  { %v764_v31 = vmax.f32 %v606_v29, 0.0  ;;  %v621_v33 = vadd.f32 %v2358_v30, %v2911_v25 }
 0x1a5   :  { %v615_v34 = vpop.f32.mrf.mxu1 }
 0x1a6   :  { %v616_v35 = vadd.f32 %v2911_v25, %v615_v34  ;;  %2417 = vmatprep.mubr.msk.f32.mxu0 %vm442_vm1, %v764_v31  ;;  %v767_v38 = vmax.f32 %v621_v33, 0.0 }
 0x1a7   :  { %v2361_v36 = vpop.f32.mrf.mxu1  ;;  %2418 = vmatmul.mubr.msk.f32.vlgmr.msra.gmra.mxu0 %vm442_vm1, %v765_v32 }
 0x1a8   :  { %v766_v37 = vmax.f32 %v616_v35, 0.0  ;;  %v631_v39 = vadd.f32 %v2361_v36, %v2911_v25 }
 0x1a9   :  { %v625_v40 = vpop.f32.mrf.mxu1 }
 0x1aa   :  { %v626_v41 = vadd.f32 %v2911_v25, %v625_v40  ;;  %2420 = vmatprep.mubr.msk.f32.mxu0 %vm442_vm1, %v766_v37  ;;  %v769_v44 = vmax.f32 %v631_v39, 0.0 }
 0x1ab   :  { %v2364_v42 = vpop.f32.mrf.mxu1  ;;  %2421 = vmatmul.mubr.msk.f32.gmra.mxu0 %vm442_vm1, %v767_v38 }
 0x1ac   :  { %v768_v43 = vmax.f32 %v626_v41, 0.0  ;;  %v641_v45 = vadd.f32 %v2364_v42, %v2911_v25 }
 0x1ad   :  { %v635_v46 = vpop.f32.mrf.mxu1 }
 0x1ae   :  { %v636_v47 = vadd.f32 %v2911_v25, %v635_v46  ;;  %2423 = vmatprep.mubr.msk.f32.mxu0 %vm442_vm1, %v768_v43  ;;  %v771_v50 = vmax.f32 %v641_v45, 0.0 }
 0x1af   :  { %v2367_v48 = vpop.f32.mrf.mxu1  ;;  %2424 = vmatmul.mubr.msk.f32.gmra.mxu0 %vm442_vm1, %v769_v44 }
 0x1b0   :  { %v770_v49 = vmax.f32 %v636_v47, 0.0  ;;  %v651_v52 = vadd.f32 %v2367_v48, %v2911_v25 }
 0x1b1   :  { %v645_v53 = vpop.f32.mrf.mxu1 }
 0x1b2   :  { %v646_v54 = vadd.f32 %v2911_v25, %v645_v53  ;;  %2426 = vmatprep.mubr.msk.f32.mxu0 %vm442_vm1, %v770_v49  ;;  %v773_v58 = vmax.f32 %v651_v52, 0.0 }
 0x1b3   :  { %v2370_v56 = vpop.f32.mrf.mxu1  ;;  %2427 = vmatmul.mubr.msk.f32.gmra.mxu0 %vm442_vm1, %v771_v50 }
 0x1b4   :  { %v772_v57 = vmax.f32 %v646_v54, 0.0  ;;  %v661_v55 = vadd.f32 %v2370_v56, %v2911_v25 }
 0x1b5   :  { %v655_v59 = vpop.f32.mrf.mxu1 }
 0x1b6   :  { %v656_v60 = vadd.f32 %v2911_v25, %v655_v59  ;;  %2429 = vmatprep.mubr.msk.f32.mxu0 %vm442_vm1, %v772_v57  ;;  %v775_v63 = vmax.f32 %v661_v55, 0.0 }
 0x1b7   :  { %v2373_v61 = vpop.f32.mrf.mxu1  ;;  %2430 = vmatmul.mubr.msk.f32.gmra.mxu0 %vm442_vm1, %v773_v58 }
 0x1b8   :  { %v774_v62 = vmax.f32 %v656_v60, 0.0  ;;  %v671_v0 = vadd.f32 %v2373_v61, %v2911_v25  ;;  %v2059_v60 = vld [vmem:[%s3284_s1 + $0x118] sm:$0xff]  ;;  %v2058_v61 = vld [vmem:[%s3284_s1 + $0x110] sm:$0xff] }
 0x1b9   :  { %v665_v1 = vpop.f32.mrf.mxu1  ;;  %2521 = vmatprep.subr.mxu0 %v2059_v60 }
 0x1ba   :  { %v666_v2 = vadd.f32 %v2911_v25, %v665_v1  ;;  %2432 = vmatprep.mubr.msk.f32.mxu0 %vm442_vm1, %v774_v62  ;;  %v777_v5 = vmax.f32 %v671_v0, 0.0  ;;  %2522 = vmatpush3.msra.mxu0 %v2059_v60  ;;  %v2056_v62 = vld [vmem:[%s3284_s1 + $0x100] sm:$0xff] }
 0x1bb   :  { %v2376_v3 = vpop.f32.mrf.mxu1  ;;  %2433 = vmatmul.mubr.msk.f32.gmra.mxu0 %vm442_vm1, %v775_v63  ;;  %2523 = vmatprep.subr.mxu0 %v2058_v61  ;;  %v2989_v63 = vld [vmem:[#allocation2 + $0x2] ss:$0 sm:$0xff] }
 0x1bc   :  { %v776_v4 = vmax.f32 %v666_v2, 0.0  ;;  %v681_v6 = vadd.f32 %v2376_v3, %v2911_v25  ;;  %2524 = vmatpush3.msra.mxu0 %v2058_v61 }
 0x1bd   :  { %v675_v7 = vpop.f32.mrf.mxu1 }
 0x1be   :  { %v676_v8 = vadd.f32 %v2911_v25, %v675_v7  ;;  %2435 = vmatprep.mubr.msk.f32.mxu0 %vm442_vm1, %v776_v4  ;;  %v779_v11 = vmax.f32 %v681_v6, 0.0 }
 0x1bf   :  { %v2379_v9 = vpop.f32.mrf.mxu1  ;;  %2436 = vmatmul.mubr.msk.f32.gmra.mxu0 %vm442_vm1, %v777_v5 }
 0x1c0   :  { %v778_v10 = vmax.f32 %v676_v8, 0.0  ;;  %v691_v12 = vadd.f32 %v2379_v9, %v2911_v25 }
 0x1c1   :  { %v685_v13 = vpop.f32.mrf.mxu1 }
 0x1c2   :  { %v686_v14 = vadd.f32 %v2911_v25, %v685_v13  ;;  %2438 = vmatprep.mubr.msk.f32.mxu0 %vm442_vm1, %v778_v10  ;;  %v781_v17 = vmax.f32 %v691_v12, 0.0 }
 0x1c3   :  { %v2382_v15 = vpop.f32.mrf.mxu1  ;;  %2439 = vmatmul.mubr.msk.f32.gmra.mxu0 %vm442_vm1, %v779_v11 }
 0x1c4   :  { %v780_v16 = vmax.f32 %v686_v14, 0.0  ;;  %v701_v18 = vadd.f32 %v2382_v15, %v2911_v25 }
 0x1c5   :  { %v695_v19 = vpop.f32.mrf.mxu1 }
 0x1c6   :  { %v696_v20 = vadd.f32 %v2911_v25, %v695_v19  ;;  %2441 = vmatprep.mubr.msk.f32.mxu0 %vm442_vm1, %v780_v16  ;;  %v783_v51 = vmax.f32 %v701_v18, 0.0 }
 0x1c7   :  { %v2385_v21 = vpop.f32.mrf.mxu1  ;;  %2442 = vmatmul.mubr.msk.f32.gmra.mxu0 %vm442_vm1, %v781_v17 }
 0x1c8   :  { %v782_v22 = vmax.f32 %v696_v20, 0.0  ;;  %v711_v23 = vadd.f32 %v2385_v21, %v2911_v25 }
 0x1c9   :  { %v705_v24 = vpop.f32.mrf.mxu1 }
 0x1ca   :  { %v706_v26 = vadd.f32 %v2911_v25, %v705_v24  ;;  %2444 = vmatprep.mubr.msk.f32.mxu0 %vm442_vm1, %v782_v22  ;;  %v785_v29 = vmax.f32 %v711_v23, 0.0 }
 0x1cb   :  { %v2388_v27 = vpop.f32.mrf.mxu1  ;;  %2445 = vmatmul.mubr.msk.f32.gmra.mxu0 %vm442_vm1, %v783_v51 }
 0x1cc   :  { %v784_v28 = vmax.f32 %v706_v26, 0.0  ;;  %v721_v30 = vadd.f32 %v2388_v27, %v2911_v25 }
 0x1cd   :  { %v715_v31 = vpop.f32.mrf.mxu1 }
 0x1ce   :  { %v716_v32 = vadd.f32 %v2911_v25, %v715_v31  ;;  %2447 = vmatprep.mubr.msk.f32.mxu0 %vm442_vm1, %v784_v28  ;;  %v787_v35 = vmax.f32 %v721_v30, 0.0 }
 0x1cf   :  { %v2391_v33 = vpop.f32.mrf.mxu1  ;;  %2448 = vmatmul.mubr.msk.f32.gmra.mxu0 %vm442_vm1, %v785_v29 }
 0x1d0   :  { %v786_v34 = vmax.f32 %v716_v32, 0.0  ;;  %v731_v36 = vadd.f32 %v2391_v33, %v2911_v25 }
 0x1d1   :  { %v725_v37 = vpop.f32.mrf.mxu1 }
 0x1d2   :  { %v726_v38 = vadd.f32 %v2911_v25, %v725_v37  ;;  %2450 = vmatprep.mubr.msk.f32.mxu0 %vm442_vm1, %v786_v34  ;;  %v789_v41 = vmax.f32 %v731_v36, 0.0 }
 0x1d3   :  { %v2394_v39 = vpop.f32.mrf.mxu1  ;;  %2451 = vmatmul.mubr.msk.f32.gmra.mxu0 %vm442_vm1, %v787_v35 }
 0x1d4   :  { %v788_v40 = vmax.f32 %v726_v38, 0.0  ;;  %v741_v42 = vadd.f32 %v2394_v39, %v2911_v25 }
 0x1d5   :  { %v735_v43 = vpop.f32.mrf.mxu1 }
 0x1d6   :  { %v736_v44 = vadd.f32 %v2911_v25, %v735_v43  ;;  %2453 = vmatprep.mubr.msk.f32.mxu0 %vm442_vm1, %v788_v40  ;;  %v791_v47 = vmax.f32 %v741_v42, 0.0 }
 0x1d7   :  { %v2397_v45 = vpop.f32.mrf.mxu1  ;;  %2454 = vmatmul.mubr.msk.f32.gmra.mxu0 %vm442_vm1, %v789_v41 }
 0x1d8   :  { %v790_v46 = vmax.f32 %v736_v44, 0.0  ;;  %v751_v48 = vadd.f32 %v2397_v45, %v2911_v25 }
 0x1d9   :  { %v745_v49 = vpop.f32.mrf.mxu1 }
 0x1da   :  { %v746_v50 = vadd.f32 %v2911_v25, %v745_v49  ;;  %2456 = vmatprep.mubr.msk.f32.mxu0 %vm442_vm1, %v790_v46  ;;  %v793_v54 = vmax.f32 %v751_v48, 0.0 }
 0x1db   :  { %v2400_v52 = vpop.f32.mrf.mxu1  ;;  %2457 = vmatmul.mubr.msk.f32.gmra.mxu0 %vm442_vm1, %v791_v47 }
 0x1dc   :  { %v792_v53 = vmax.f32 %v746_v50, 0.0  ;;  %v761_v56 = vadd.f32 %v2400_v52, %v2911_v25 }
 0x1dd   :  { %v755_v57 = vpop.f32.mrf.mxu1 }
 0x1de   :  { %v756_v58 = vadd.f32 %v2911_v25, %v755_v57  ;;  %2459 = vmatprep.mubr.msk.f32.mxu0 %vm442_vm1, %v792_v53  ;;  %v795_v59 = vmax.f32 %v761_v56, 0.0  ;;  %v2057_v25 = vld [vmem:[%s3284_s1 + $0x108] sm:$0xff] }
 0x1df   :  { %2460 = vmatmul.mubr.msk.f32.gmra.mxu0 %vm442_vm1, %v793_v54  ;;  %2525 = vmatprep.subr.mxu0 %v2057_v25 }
 0x1e0   :  { %v794_v55 = vmax.f32 %v756_v58, 0.0  ;;  %2526 = vmatpush3.msra.mxu0 %v2057_v25 }
 0x1e1   :  { %2527 = vmatprep.subr.mxu0 %v2056_v62 }
 0x1e2   :  { %2462 = vmatprep.mubr.msk.f32.mxu0 %vm442_vm1, %v794_v55  ;;  %2528 = vmatpush3.msra.mxu0 %v2056_v62 }
 0x1e3   :  { %2463 = vmatmul.mubr.msk.f32.gmra.mxu0 %vm442_vm1, %v795_v59 }
 0x267   :  { %v2419_v0 = vpop.f32.mrf.mxu0 }
 0x268   :  { %v981_v1 = vadd.f32 %v2419_v0, %v2989_v63 }
 0x269   :  { %v975_v2 = vpop.f32.mrf.mxu0 }
 0x26a   :  { %v976_v3 = vadd.f32 %v2989_v63, %v975_v2  ;;  %v1135_v6 = vmax.f32 %v981_v1, 0.0 }
 0x26b   :  { %v2422_v4 = vpop.f32.mrf.mxu0 }
 0x26c   :  { %v1134_v5 = vmax.f32 %v976_v3, 0.0  ;;  %v991_v7 = vadd.f32 %v2422_v4, %v2989_v63 }
 0x26d   :  { %v985_v8 = vpop.f32.mrf.mxu0 }
 0x26e   :  { %v986_v9 = vadd.f32 %v2989_v63, %v985_v8  ;;  %2473 = vmatprep.mubr.msk.f32.mxu1 %vm71_vm0, %v1134_v5  ;;  %v1137_v12 = vmax.f32 %v991_v7, 0.0 }
 0x26f   :  { %v2425_v10 = vpop.f32.mrf.mxu0  ;;  %2474 = vmatmul.mubr.msk.f32.vlgmr.msra.gmra.mxu1 %vm71_vm0, %v1135_v6 }
 0x270   :  { %v1136_v11 = vmax.f32 %v986_v9, 0.0  ;;  %v1001_v13 = vadd.f32 %v2425_v10, %v2989_v63 }
 0x271   :  { %v995_v14 = vpop.f32.mrf.mxu0 }
 0x272   :  { %v996_v15 = vadd.f32 %v2989_v63, %v995_v14  ;;  %2476 = vmatprep.mubr.msk.f32.mxu1 %vm71_vm0, %v1136_v11  ;;  %v1139_v18 = vmax.f32 %v1001_v13, 0.0 }
 0x273   :  { %v2428_v16 = vpop.f32.mrf.mxu0  ;;  %2477 = vmatmul.mubr.msk.f32.gmra.mxu1 %vm71_vm0, %v1137_v12 }
 0x274   :  { %v1138_v17 = vmax.f32 %v996_v15, 0.0  ;;  %v1011_v19 = vadd.f32 %v2428_v16, %v2989_v63 }
 0x275   :  { %v1005_v20 = vpop.f32.mrf.mxu0 }
 0x276   :  { %v1006_v21 = vadd.f32 %v2989_v63, %v1005_v20  ;;  %2479 = vmatprep.mubr.msk.f32.mxu1 %vm71_vm0, %v1138_v17  ;;  %v1141_v23 = vmax.f32 %v1011_v19, 0.0 }
 0x277   :  { %v2431_v22 = vpop.f32.mrf.mxu0  ;;  %2480 = vmatmul.mubr.msk.f32.gmra.mxu1 %vm71_vm0, %v1139_v18 }
 0x278   :  { %v1140_v51 = vmax.f32 %v1006_v21, 0.0  ;;  %v1021_v24 = vadd.f32 %v2431_v22, %v2989_v63 }
 0x279   :  { %v1015_v26 = vpop.f32.mrf.mxu0 }
 0x27a   :  { %v1016_v27 = vadd.f32 %v2989_v63, %v1015_v26  ;;  %2482 = vmatprep.mubr.msk.f32.mxu1 %vm71_vm0, %v1140_v51  ;;  %v1143_v30 = vmax.f32 %v1021_v24, 0.0 }
 0x27b   :  { %v2434_v28 = vpop.f32.mrf.mxu0  ;;  %2483 = vmatmul.mubr.msk.f32.gmra.mxu1 %vm71_vm0, %v1141_v23 }
 0x27c   :  { %v1142_v29 = vmax.f32 %v1016_v27, 0.0  ;;  %v1031_v31 = vadd.f32 %v2434_v28, %v2989_v63 }
 0x27d   :  { %v1025_v32 = vpop.f32.mrf.mxu0 }
 0x27e   :  { %v1026_v33 = vadd.f32 %v2989_v63, %v1025_v32  ;;  %2485 = vmatprep.mubr.msk.f32.mxu1 %vm71_vm0, %v1142_v29  ;;  %v1145_v36 = vmax.f32 %v1031_v31, 0.0 }
 0x27f   :  { %v2437_v34 = vpop.f32.mrf.mxu0  ;;  %2486 = vmatmul.mubr.msk.f32.gmra.mxu1 %vm71_vm0, %v1143_v30 }
 0x280   :  { %v1144_v35 = vmax.f32 %v1026_v33, 0.0  ;;  %v1041_v37 = vadd.f32 %v2437_v34, %v2989_v63  ;;  %v3055_v33 = vld [vmem:[#allocation2 + $0x3] ss:$0 sm:$0xff] }
 0x281   :  { %v1035_v38 = vpop.f32.mrf.mxu0 }
 0x282   :  { %v1036_v39 = vadd.f32 %v2989_v63, %v1035_v38  ;;  %2488 = vmatprep.mubr.msk.f32.mxu1 %vm71_vm0, %v1144_v35  ;;  %v1147_v42 = vmax.f32 %v1041_v37, 0.0 }
 0x283   :  { %v2440_v40 = vpop.f32.mrf.mxu0  ;;  %2489 = vmatmul.mubr.msk.f32.gmra.mxu1 %vm71_vm0, %v1145_v36 }
 0x284   :  { %v1146_v41 = vmax.f32 %v1036_v39, 0.0  ;;  %v1051_v43 = vadd.f32 %v2440_v40, %v2989_v63 }
 0x285   :  { %v1045_v44 = vpop.f32.mrf.mxu0 }
 0x286   :  { %v1046_v45 = vadd.f32 %v2989_v63, %v1045_v44  ;;  %2491 = vmatprep.mubr.msk.f32.mxu1 %vm71_vm0, %v1146_v41  ;;  %v1149_v48 = vmax.f32 %v1051_v43, 0.0 }
 0x287   :  { %v2443_v46 = vpop.f32.mrf.mxu0  ;;  %2492 = vmatmul.mubr.msk.f32.gmra.mxu1 %vm71_vm0, %v1147_v42 }
 0x288   :  { %v1148_v47 = vmax.f32 %v1046_v45, 0.0  ;;  %v1061_v49 = vadd.f32 %v2443_v46, %v2989_v63 }
 0x289   :  { %v1055_v50 = vpop.f32.mrf.mxu0 }
 0x28a   :  { %v1056_v52 = vadd.f32 %v2989_v63, %v1055_v50  ;;  %2494 = vmatprep.mubr.msk.f32.mxu1 %vm71_vm0, %v1148_v47  ;;  %v1151_v56 = vmax.f32 %v1061_v49, 0.0 }
 0x28b   :  { %v2446_v53 = vpop.f32.mrf.mxu0  ;;  %2495 = vmatmul.mubr.msk.f32.gmra.mxu1 %vm71_vm0, %v1149_v48 }
 0x28c   :  { %v1150_v54 = vmax.f32 %v1056_v52, 0.0  ;;  %v1071_v57 = vadd.f32 %v2446_v53, %v2989_v63 }
 0x28d   :  { %v1065_v58 = vpop.f32.mrf.mxu0 }
 0x28e   :  { %v1066_v55 = vadd.f32 %v2989_v63, %v1065_v58  ;;  %2497 = vmatprep.mubr.msk.f32.mxu1 %vm71_vm0, %v1150_v54  ;;  %v1153_v61 = vmax.f32 %v1071_v57, 0.0 }
 0x28f   :  { %v2449_v59 = vpop.f32.mrf.mxu0  ;;  %2498 = vmatmul.mubr.msk.f32.gmra.mxu1 %vm71_vm0, %v1151_v56 }
 0x290   :  { %v1152_v60 = vmax.f32 %v1066_v55, 0.0  ;;  %v1081_v25 = vadd.f32 %v2449_v59, %v2989_v63 }
 0x291   :  { %v1075_v62 = vpop.f32.mrf.mxu0 }
 0x292   :  { %v1076_v0 = vadd.f32 %v2989_v63, %v1075_v62  ;;  %2500 = vmatprep.mubr.msk.f32.mxu1 %vm71_vm0, %v1152_v60  ;;  %v1155_v3 = vmax.f32 %v1081_v25, 0.0 }
 0x293   :  { %v2452_v1 = vpop.f32.mrf.mxu0  ;;  %2501 = vmatmul.mubr.msk.f32.gmra.mxu1 %vm71_vm0, %v1153_v61 }
 0x294   :  { %v1154_v2 = vmax.f32 %v1076_v0, 0.0  ;;  %v1091_v4 = vadd.f32 %v2452_v1, %v2989_v63 }
 0x295   :  { %v1085_v5 = vpop.f32.mrf.mxu0 }
 0x296   :  { %v1086_v6 = vadd.f32 %v2989_v63, %v1085_v5  ;;  %2503 = vmatprep.mubr.msk.f32.mxu1 %vm71_vm0, %v1154_v2  ;;  %v1157_v9 = vmax.f32 %v1091_v4, 0.0 }
 0x297   :  { %v2455_v7 = vpop.f32.mrf.mxu0  ;;  %2504 = vmatmul.mubr.msk.f32.gmra.mxu1 %vm71_vm0, %v1155_v3 }
 0x298   :  { %v1156_v8 = vmax.f32 %v1086_v6, 0.0  ;;  %v1101_v10 = vadd.f32 %v2455_v7, %v2989_v63 }
 0x299   :  { %v1095_v11 = vpop.f32.mrf.mxu0 }
 0x29a   :  { %v1096_v12 = vadd.f32 %v2989_v63, %v1095_v11  ;;  %2506 = vmatprep.mubr.msk.f32.mxu1 %vm71_vm0, %v1156_v8  ;;  %v1159_v15 = vmax.f32 %v1101_v10, 0.0 }
 0x29b   :  { %v2458_v13 = vpop.f32.mrf.mxu0  ;;  %2507 = vmatmul.mubr.msk.f32.gmra.mxu1 %vm71_vm0, %v1157_v9 }
 0x29c   :  { %v1158_v14 = vmax.f32 %v1096_v12, 0.0  ;;  %v1111_v16 = vadd.f32 %v2458_v13, %v2989_v63 }
 0x29d   :  { %v1105_v17 = vpop.f32.mrf.mxu0 }
 0x29e   :  { %v1106_v18 = vadd.f32 %v2989_v63, %v1105_v17  ;;  %2509 = vmatprep.mubr.msk.f32.mxu1 %vm71_vm0, %v1158_v14  ;;  %v1161_v21 = vmax.f32 %v1111_v16, 0.0 }
 0x29f   :  { %v2461_v19 = vpop.f32.mrf.mxu0  ;;  %2510 = vmatmul.mubr.msk.f32.gmra.mxu1 %vm71_vm0, %v1159_v15 }
 0x2a0   :  { %v1160_v20 = vmax.f32 %v1106_v18, 0.0  ;;  %v1121_v22 = vadd.f32 %v2461_v19, %v2989_v63 }
 0x2a1   :  { %v1115_v51 = vpop.f32.mrf.mxu0 }
 0x2a2   :  { %v1116_v23 = vadd.f32 %v2989_v63, %v1115_v51  ;;  %2512 = vmatprep.mubr.msk.f32.mxu1 %vm71_vm0, %v1160_v20  ;;  %v1163_v27 = vmax.f32 %v1121_v22, 0.0 }
 0x2a3   :  { %v2464_v24 = vpop.f32.mrf.mxu0  ;;  %2513 = vmatmul.mubr.msk.f32.gmra.mxu1 %vm71_vm0, %v1161_v21 }
 0x2a4   :  { %v1162_v26 = vmax.f32 %v1116_v23, 0.0  ;;  %v1131_v28 = vadd.f32 %v2464_v24, %v2989_v63 }
 0x2a5   :  { %v1125_v29 = vpop.f32.mrf.mxu0 }
 0x2a6   :  { %v1126_v30 = vadd.f32 %v2989_v63, %v1125_v29  ;;  %2515 = vmatprep.mubr.msk.f32.mxu1 %vm71_vm0, %v1162_v26  ;;  %v1165_v32 = vmax.f32 %v1131_v28, 0.0 }
 0x2a7   :  { %2516 = vmatmul.mubr.msk.f32.gmra.mxu1 %vm71_vm0, %v1163_v27 }
 0x2a8   :  { %v1164_v31 = vmax.f32 %v1126_v30, 0.0 }
 0x2aa   :  { %2518 = vmatprep.mubr.msk.f32.mxu1 %vm71_vm0, %v1164_v31 }
 0x2ab   :  { %2519 = vmatmul.mubr.msk.f32.gmra.mxu1 %vm71_vm0, %v1165_v32 }
 0x32f   :  { %v2475_v34 = vpop.f32.mrf.mxu1 }
 0x330   :  { %v1347_v35 = vadd.f32 %v2475_v34, %v3055_v33 }
 0x331   :  { %v1341_v36 = vpop.f32.mrf.mxu1 }
 0x332   :  { %v1342_v37 = vadd.f32 %v3055_v33, %v1341_v36  ;;  %v1501_v39 = vmax.f32 %v1347_v35, 0.0 }
 0x333   :  { %v2478_v38 = vpop.f32.mrf.mxu1 }
 0x334   :  { %v1500_v63 = vmax.f32 %v1342_v37, 0.0  ;;  %v1357_v40 = vadd.f32 %v2478_v38, %v3055_v33 }
 0x335   :  { %v1351_v41 = vpop.f32.mrf.mxu1 }
 0x336   :  { %v1352_v42 = vadd.f32 %v3055_v33, %v1351_v41  ;;  %2529 = vmatprep.mubr.msk.f32.mxu0 %vm71_vm0, %v1500_v63  ;;  %v1503_v45 = vmax.f32 %v1357_v40, 0.0 }
 0x337   :  { %v2481_v43 = vpop.f32.mrf.mxu1  ;;  %2530 = vmatmul.mubr.msk.f32.vlgmr.msra.gmra.mxu0 %vm71_vm0, %v1501_v39 }
 0x338   :  { %v1502_v44 = vmax.f32 %v1352_v42, 0.0  ;;  %v1367_v46 = vadd.f32 %v2481_v43, %v3055_v33 }
 0x339   :  { %v1361_v47 = vpop.f32.mrf.mxu1 }
 0x33a   :  { %v1362_v48 = vadd.f32 %v3055_v33, %v1361_v47  ;;  %2532 = vmatprep.mubr.msk.f32.mxu0 %vm71_vm0, %v1502_v44  ;;  %v1505_v52 = vmax.f32 %v1367_v46, 0.0 }
 0x33b   :  { %v2484_v49 = vpop.f32.mrf.mxu1  ;;  %2533 = vmatmul.mubr.msk.f32.gmra.mxu0 %vm71_vm0, %v1503_v45 }
 0x33c   :  { %v1504_v50 = vmax.f32 %v1362_v48, 0.0  ;;  %v1377_v53 = vadd.f32 %v2484_v49, %v3055_v33 }
 0x33d   :  { %v1371_v54 = vpop.f32.mrf.mxu1 }
 0x33e   :  { %v1372_v56 = vadd.f32 %v3055_v33, %v1371_v54  ;;  %2535 = vmatprep.mubr.msk.f32.mxu0 %vm71_vm0, %v1504_v50  ;;  %v1507_v55 = vmax.f32 %v1377_v53, 0.0 }
 0x33f   :  { %v2487_v57 = vpop.f32.mrf.mxu1  ;;  %2536 = vmatmul.mubr.msk.f32.gmra.mxu0 %vm71_vm0, %v1505_v52 }
 0x340   :  { %v1506_v58 = vmax.f32 %v1372_v56, 0.0  ;;  %v1387_v59 = vadd.f32 %v2487_v57, %v3055_v33 }
 0x341   :  { %v1381_v60 = vpop.f32.mrf.mxu1 }
 0x342   :  { %v1382_v61 = vadd.f32 %v3055_v33, %v1381_v60  ;;  %2538 = vmatprep.mubr.msk.f32.mxu0 %vm71_vm0, %v1506_v58  ;;  %v1509_v0 = vmax.f32 %v1387_v59, 0.0 }
 0x343   :  { %v2490_v25 = vpop.f32.mrf.mxu1  ;;  %2539 = vmatmul.mubr.msk.f32.gmra.mxu0 %vm71_vm0, %v1507_v55 }
 0x344   :  { %v1508_v62 = vmax.f32 %v1382_v61, 0.0  ;;  %v1397_v1 = vadd.f32 %v2490_v25, %v3055_v33 }
 0x345   :  { %v1391_v2 = vpop.f32.mrf.mxu1 }
 0x346   :  { %v1392_v3 = vadd.f32 %v3055_v33, %v1391_v2  ;;  %2541 = vmatprep.mubr.msk.f32.mxu0 %vm71_vm0, %v1508_v62  ;;  %v1511_v6 = vmax.f32 %v1397_v1, 0.0 }
 0x347   :  { %v2493_v4 = vpop.f32.mrf.mxu1  ;;  %2542 = vmatmul.mubr.msk.f32.gmra.mxu0 %vm71_vm0, %v1509_v0 }
 0x348   :  { %v1510_v5 = vmax.f32 %v1392_v3, 0.0  ;;  %v1407_v7 = vadd.f32 %v2493_v4, %v3055_v33  ;;  %v3121_v3 = vld [vmem:[#allocation2 + $0x4] ss:$0 sm:$0xff] }
 0x349   :  { %v1401_v8 = vpop.f32.mrf.mxu1 }
 0x34a   :  { %v1402_v9 = vadd.f32 %v3055_v33, %v1401_v8  ;;  %2544 = vmatprep.mubr.msk.f32.mxu0 %vm71_vm0, %v1510_v5  ;;  %v1513_v12 = vmax.f32 %v1407_v7, 0.0 }
 0x34b   :  { %v2496_v10 = vpop.f32.mrf.mxu1  ;;  %2545 = vmatmul.mubr.msk.f32.gmra.mxu0 %vm71_vm0, %v1511_v6 }
 0x34c   :  { %v1512_v11 = vmax.f32 %v1402_v9, 0.0  ;;  %v1417_v13 = vadd.f32 %v2496_v10, %v3055_v33 }
 0x34d   :  { %v1411_v14 = vpop.f32.mrf.mxu1 }
 0x34e   :  { %v1412_v15 = vadd.f32 %v3055_v33, %v1411_v14  ;;  %2547 = vmatprep.mubr.msk.f32.mxu0 %vm71_vm0, %v1512_v11  ;;  %v1515_v18 = vmax.f32 %v1417_v13, 0.0 }
 0x34f   :  { %v2499_v16 = vpop.f32.mrf.mxu1  ;;  %2548 = vmatmul.mubr.msk.f32.gmra.mxu0 %vm71_vm0, %v1513_v12 }
 0x350   :  { %v1514_v17 = vmax.f32 %v1412_v15, 0.0  ;;  %v1427_v19 = vadd.f32 %v2499_v16, %v3055_v33 }
 0x351   :  { %v1421_v20 = vpop.f32.mrf.mxu1 }
 0x352   :  { %v1422_v21 = vadd.f32 %v3055_v33, %v1421_v20  ;;  %2550 = vmatprep.mubr.msk.f32.mxu0 %vm71_vm0, %v1514_v17  ;;  %v1517_v23 = vmax.f32 %v1427_v19, 0.0 }
 0x353   :  { %v2502_v22 = vpop.f32.mrf.mxu1  ;;  %2551 = vmatmul.mubr.msk.f32.gmra.mxu0 %vm71_vm0, %v1515_v18 }
 0x354   :  { %v1516_v51 = vmax.f32 %v1422_v21, 0.0  ;;  %v1437_v24 = vadd.f32 %v2502_v22, %v3055_v33 }
 0x355   :  { %v1431_v26 = vpop.f32.mrf.mxu1 }
 0x356   :  { %v1432_v27 = vadd.f32 %v3055_v33, %v1431_v26  ;;  %2553 = vmatprep.mubr.msk.f32.mxu0 %vm71_vm0, %v1516_v51  ;;  %v1519_v30 = vmax.f32 %v1437_v24, 0.0 }
 0x357   :  { %v2505_v28 = vpop.f32.mrf.mxu1  ;;  %2554 = vmatmul.mubr.msk.f32.gmra.mxu0 %vm71_vm0, %v1517_v23 }
 0x358   :  { %v1518_v29 = vmax.f32 %v1432_v27, 0.0  ;;  %v1447_v31 = vadd.f32 %v2505_v28, %v3055_v33 }
 0x359   :  { %v1441_v32 = vpop.f32.mrf.mxu1 }
 0x35a   :  { %v1442_v34 = vadd.f32 %v3055_v33, %v1441_v32  ;;  %2556 = vmatprep.mubr.msk.f32.mxu0 %vm71_vm0, %v1518_v29  ;;  %v1521_v37 = vmax.f32 %v1447_v31, 0.0 }
 0x35b   :  { %v2508_v35 = vpop.f32.mrf.mxu1  ;;  %2557 = vmatmul.mubr.msk.f32.gmra.mxu0 %vm71_vm0, %v1519_v30 }
 0x35c   :  { %v1520_v36 = vmax.f32 %v1442_v34, 0.0  ;;  %v1457_v38 = vadd.f32 %v2508_v35, %v3055_v33 }
 0x35d   :  { %v1451_v63 = vpop.f32.mrf.mxu1 }
 0x35e   :  { %v1452_v39 = vadd.f32 %v3055_v33, %v1451_v63  ;;  %2559 = vmatprep.mubr.msk.f32.mxu0 %vm71_vm0, %v1520_v36  ;;  %v1523_v42 = vmax.f32 %v1457_v38, 0.0 }
 0x35f   :  { %v2511_v40 = vpop.f32.mrf.mxu1  ;;  %2560 = vmatmul.mubr.msk.f32.gmra.mxu0 %vm71_vm0, %v1521_v37 }
 0x360   :  { %v1522_v41 = vmax.f32 %v1452_v39, 0.0  ;;  %v1467_v43 = vadd.f32 %v2511_v40, %v3055_v33 }
 0x361   :  { %v1461_v44 = vpop.f32.mrf.mxu1 }
 0x362   :  { %v1462_v45 = vadd.f32 %v3055_v33, %v1461_v44  ;;  %2562 = vmatprep.mubr.msk.f32.mxu0 %vm71_vm0, %v1522_v41  ;;  %v1525_v48 = vmax.f32 %v1467_v43, 0.0 }
 0x363   :  { %v2514_v46 = vpop.f32.mrf.mxu1  ;;  %2563 = vmatmul.mubr.msk.f32.gmra.mxu0 %vm71_vm0, %v1523_v42 }
 0x364   :  { %v1524_v47 = vmax.f32 %v1462_v45, 0.0  ;;  %v1477_v49 = vadd.f32 %v2514_v46, %v3055_v33 }
 0x365   :  { %v1471_v50 = vpop.f32.mrf.mxu1 }
 0x366   :  { %v1472_v52 = vadd.f32 %v3055_v33, %v1471_v50  ;;  %2565 = vmatprep.mubr.msk.f32.mxu0 %vm71_vm0, %v1524_v47  ;;  %v1527_v56 = vmax.f32 %v1477_v49, 0.0 }
 0x367   :  { %v2517_v53 = vpop.f32.mrf.mxu1  ;;  %2566 = vmatmul.mubr.msk.f32.gmra.mxu0 %vm71_vm0, %v1525_v48 }
 0x368   :  { %v1526_v54 = vmax.f32 %v1472_v52, 0.0  ;;  %v1487_v57 = vadd.f32 %v2517_v53, %v3055_v33 }
 0x369   :  { %v1481_v58 = vpop.f32.mrf.mxu1 }
 0x36a   :  { %v1482_v55 = vadd.f32 %v3055_v33, %v1481_v58  ;;  %2568 = vmatprep.mubr.msk.f32.mxu0 %vm71_vm0, %v1526_v54  ;;  %v1529_v61 = vmax.f32 %v1487_v57, 0.0 }
 0x36b   :  { %v2520_v59 = vpop.f32.mrf.mxu1  ;;  %2569 = vmatmul.mubr.msk.f32.gmra.mxu0 %vm71_vm0, %v1527_v56 }
 0x36c   :  { %v1528_v60 = vmax.f32 %v1482_v55, 0.0  ;;  %v1497_v25 = vadd.f32 %v2520_v59, %v3055_v33 }
 0x36d   :  { %v1491_v62 = vpop.f32.mrf.mxu1 }
 0x36e   :  { %v1492_v0 = vadd.f32 %v3055_v33, %v1491_v62  ;;  %2571 = vmatprep.mubr.msk.f32.mxu0 %vm71_vm0, %v1528_v60  ;;  %v1531_v2 = vmax.f32 %v1497_v25, 0.0 }
 0x36f   :  { %2572 = vmatmul.mubr.msk.f32.gmra.mxu0 %vm71_vm0, %v1529_v61 }
 0x370   :  { %v1530_v1 = vmax.f32 %v1492_v0, 0.0 }
 0x372   :  { %2574 = vmatprep.mubr.msk.f32.mxu0 %vm71_vm0, %v1530_v1 }
 0x373   :  { %2575 = vmatmul.mubr.msk.f32.gmra.mxu0 %vm71_vm0, %v1531_v2 }
 0x3f7   :  { %v2531_v4 = vpop.f32.mrf.mxu0 }
 0x3f8   :  { %v1713_v5 = vadd.f32 %v2531_v4, %v3121_v3 }
 0x3f9   :  { %v1707_v6 = vpop.f32.mrf.mxu0 }
 0x3fa   :  { %1868 = vst.msk [vmem:[%s3286_s3 + $0x8] sm:$0xff] %vm1866_vm2, %v1713_v5  ;;  %v1708_v33 = vadd.f32 %v3121_v3, %v1707_v6 }
 0x3fb   :  { %v2534_v7 = vpop.f32.mrf.mxu0 }
 0x3fc   :  { %1867 = vst.msk [vmem:[%s3286_s3] sm:$0xff] %vm1866_vm2, %v1708_v33  ;;  %v1723_v8 = vadd.f32 %v2534_v7, %v3121_v3 }
 0x3fd   :  { %v1717_v9 = vpop.f32.mrf.mxu0 }
 0x3fe   :  { %1870 = vst.msk [vmem:[%s3286_s3 + $0x18] sm:$0xff] %vm1866_vm2, %v1723_v8  ;;  %v1718_v10 = vadd.f32 %v3121_v3, %v1717_v9 }
 0x3ff   :  { %v2537_v11 = vpop.f32.mrf.mxu0 }
 0x400   :  { %1869 = vst.msk [vmem:[%s3286_s3 + $0x10] sm:$0xff] %vm1866_vm2, %v1718_v10  ;;  %v1733_v12 = vadd.f32 %v2537_v11, %v3121_v3 }
 0x401   :  { %v1727_v13 = vpop.f32.mrf.mxu0 }
 0x402   :  { %1872 = vst.msk [vmem:[%s3286_s3 + $0x28] sm:$0xff] %vm1866_vm2, %v1733_v12  ;;  %v1728_v14 = vadd.f32 %v3121_v3, %v1727_v13 }
 0x403   :  { %v2540_v15 = vpop.f32.mrf.mxu0 }
 0x404   :  { %1871 = vst.msk [vmem:[%s3286_s3 + $0x20] sm:$0xff] %vm1866_vm2, %v1728_v14  ;;  %v1743_v16 = vadd.f32 %v2540_v15, %v3121_v3 }
 0x405   :  { %v1737_v17 = vpop.f32.mrf.mxu0 }
 0x406   :  { %1874 = vst.msk [vmem:[%s3286_s3 + $0x38] sm:$0xff] %vm1866_vm2, %v1743_v16  ;;  %v1738_v18 = vadd.f32 %v3121_v3, %v1737_v17 }
 0x407   :  { %v2543_v19 = vpop.f32.mrf.mxu0 }
 0x408   :  { %1873 = vst.msk [vmem:[%s3286_s3 + $0x30] sm:$0xff] %vm1866_vm2, %v1738_v18  ;;  %v1753_v20 = vadd.f32 %v2543_v19, %v3121_v3 }
 0x409   :  { %v1747_v21 = vpop.f32.mrf.mxu0 }
 0x40a   :  { %1876 = vst.msk [vmem:[%s3286_s3 + $0x48] sm:$0xff] %vm1866_vm2, %v1753_v20  ;;  %v1748_v22 = vadd.f32 %v3121_v3, %v1747_v21 }
 0x40b   :  { %v2546_v51 = vpop.f32.mrf.mxu0 }
 0x40c   :  { %1875 = vst.msk [vmem:[%s3286_s3 + $0x40] sm:$0xff] %vm1866_vm2, %v1748_v22  ;;  %v1763_v23 = vadd.f32 %v2546_v51, %v3121_v3 }
 0x40d   :  { %v1757_v24 = vpop.f32.mrf.mxu0 }
 0x40e   :  { %1878 = vst.msk [vmem:[%s3286_s3 + $0x58] sm:$0xff] %vm1866_vm2, %v1763_v23  ;;  %v1758_v26 = vadd.f32 %v3121_v3, %v1757_v24 }
 0x40f   :  { %v2549_v27 = vpop.f32.mrf.mxu0 }
 0x410   :  { %1877 = vst.msk [vmem:[%s3286_s3 + $0x50] sm:$0xff] %vm1866_vm2, %v1758_v26  ;;  %v1773_v28 = vadd.f32 %v2549_v27, %v3121_v3 }
 0x411   :  { %v1767_v29 = vpop.f32.mrf.mxu0 }
 0x412   :  { %1880 = vst.msk [vmem:[%s3286_s3 + $0x68] sm:$0xff] %vm1866_vm2, %v1773_v28  ;;  %v1768_v30 = vadd.f32 %v3121_v3, %v1767_v29 }
 0x413   :  { %v2552_v31 = vpop.f32.mrf.mxu0 }
 0x414   :  { %1879 = vst.msk [vmem:[%s3286_s3 + $0x60] sm:$0xff] %vm1866_vm2, %v1768_v30  ;;  %v1783_v32 = vadd.f32 %v2552_v31, %v3121_v3 }
 0x415   :  { %v1777_v34 = vpop.f32.mrf.mxu0 }
 0x416   :  { %1882 = vst.msk [vmem:[%s3286_s3 + $0x78] sm:$0xff] %vm1866_vm2, %v1783_v32  ;;  %v1778_v35 = vadd.f32 %v3121_v3, %v1777_v34 }
 0x417   :  { %v2555_v36 = vpop.f32.mrf.mxu0 }
 0x418   :  { %1881 = vst.msk [vmem:[%s3286_s3 + $0x70] sm:$0xff] %vm1866_vm2, %v1778_v35  ;;  %v1793_v37 = vadd.f32 %v2555_v36, %v3121_v3 }
 0x419   :  { %v1787_v38 = vpop.f32.mrf.mxu0 }
 0x41a   :  { %1884 = vst.msk [vmem:[%s3286_s3 + $0x88] sm:$0xff] %vm1866_vm2, %v1793_v37  ;;  %v1788_v63 = vadd.f32 %v3121_v3, %v1787_v38 }
 0x41b   :  { %v2558_v39 = vpop.f32.mrf.mxu0 }
 0x41c   :  { %1883 = vst.msk [vmem:[%s3286_s3 + $0x80] sm:$0xff] %vm1866_vm2, %v1788_v63  ;;  %v1803_v40 = vadd.f32 %v2558_v39, %v3121_v3 }
 0x41d   :  { %v1797_v41 = vpop.f32.mrf.mxu0 }
 0x41e   :  { %1886 = vst.msk [vmem:[%s3286_s3 + $0x98] sm:$0xff] %vm1866_vm2, %v1803_v40  ;;  %v1798_v42 = vadd.f32 %v3121_v3, %v1797_v41 }
 0x41f   :  { %v2561_v43 = vpop.f32.mrf.mxu0 }
 0x420   :  { %1885 = vst.msk [vmem:[%s3286_s3 + $0x90] sm:$0xff] %vm1866_vm2, %v1798_v42  ;;  %v1813_v44 = vadd.f32 %v2561_v43, %v3121_v3 }
 0x421   :  { %v1807_v45 = vpop.f32.mrf.mxu0 }
 0x422   :  { %1888 = vst.msk [vmem:[%s3286_s3 + $0xa8] sm:$0xff] %vm1866_vm2, %v1813_v44  ;;  %v1808_v46 = vadd.f32 %v3121_v3, %v1807_v45 }
 0x423   :  { %v2564_v47 = vpop.f32.mrf.mxu0 }
 0x424   :  { %1887 = vst.msk [vmem:[%s3286_s3 + $0xa0] sm:$0xff] %vm1866_vm2, %v1808_v46  ;;  %v1823_v48 = vadd.f32 %v2564_v47, %v3121_v3 }
 0x425   :  { %v1817_v49 = vpop.f32.mrf.mxu0 }
 0x426   :  { %1890 = vst.msk [vmem:[%s3286_s3 + $0xb8] sm:$0xff] %vm1866_vm2, %v1823_v48  ;;  %v1818_v50 = vadd.f32 %v3121_v3, %v1817_v49 }
 0x427   :  { %v2567_v52 = vpop.f32.mrf.mxu0 }
 0x428   :  { %1889 = vst.msk [vmem:[%s3286_s3 + $0xb0] sm:$0xff] %vm1866_vm2, %v1818_v50  ;;  %v1833_v53 = vadd.f32 %v2567_v52, %v3121_v3 }
 0x429   :  { %v1827_v54 = vpop.f32.mrf.mxu0 }
 0x42a   :  { %1892 = vst.msk [vmem:[%s3286_s3 + $0xc8] sm:$0xff] %vm1866_vm2, %v1833_v53  ;;  %v1828_v56 = vadd.f32 %v3121_v3, %v1827_v54 }
 0x42b   :  { %v2570_v57 = vpop.f32.mrf.mxu0 }
 0x42c   :  { %1891 = vst.msk [vmem:[%s3286_s3 + $0xc0] sm:$0xff] %vm1866_vm2, %v1828_v56  ;;  %v1843_v58 = vadd.f32 %v2570_v57, %v3121_v3 }
 0x42d   :  { %v1837_v55 = vpop.f32.mrf.mxu0 }
 0x42e   :  { %1894 = vst.msk [vmem:[%s3286_s3 + $0xd8] sm:$0xff] %vm1866_vm2, %v1843_v58  ;;  %v1838_v59 = vadd.f32 %v3121_v3, %v1837_v55 }
 0x42f   :  { %v2573_v60 = vpop.f32.mrf.mxu0 }
 0x430   :  { %1893 = vst.msk [vmem:[%s3286_s3 + $0xd0] sm:$0xff] %vm1866_vm2, %v1838_v59  ;;  %v1853_v61 = vadd.f32 %v2573_v60, %v3121_v3 }
 0x431   :  { %v1847_v25 = vpop.f32.mrf.mxu0 }
 0x432   :  { %1896 = vst.msk [vmem:[%s3286_s3 + $0xe8] sm:$0xff] %vm1866_vm2, %v1853_v61  ;;  %v1848_v62 = vadd.f32 %v3121_v3, %v1847_v25 }
 0x433   :  { %v2576_v0 = vpop.f32.mrf.mxu0 }
 0x434   :  { %1895 = vst.msk [vmem:[%s3286_s3 + $0xe0] sm:$0xff] %vm1866_vm2, %v1848_v62  ;;  %v1863_v1 = vadd.f32 %v2576_v0, %v3121_v3 }
 0x435   :  { %v1857_v2 = vpop.f32.mrf.mxu0 }
 0x436   :  { %1898 = vst.msk [vmem:[%s3286_s3 + $0xf8] sm:$0xff] %vm1866_vm2, %v1863_v1  ;;  %v1858_v4 = vadd.f32 %v3121_v3, %v1857_v2 }
 0x438   :  { %1897 = vst.msk [vmem:[%s3286_s3 + $0xf0] sm:$0xff] %vm1866_vm2, %v1858_v4 }
 0x439   :  { %1903 = vsyncpa [#allocation3], 1 }

</bundles_post_ra>
